<compile_context>
chip_gen: v5e
topology: v5e:2x2
jax: 0.10.0
libtpu: 0.0.40
codegen_flags: <defaults>
</compile_context>

<pallas_src>
import jax
import jax.numpy as jnp
from jax.experimental import pallas as pl
from jax.experimental.pallas import tpu as pltpu

LANE = 128
SUBLANE = 8


def _round_up(x, m):
    return (x + m - 1) // m * m


def mlp_kernel(x_ref, w_ref, b_ref, o_ref):
    """x_ref: (tb, P) bf16, w_ref: (L, P, P) bf16, b_ref: (L, 1, P) f32."""
    n_layers = w_ref.shape[0]
    h = x_ref[...]                                           # bf16 activations
    # fc1..fc5: bf16 MXU matmul, f32 accumulate, f32 bias+ReLU epilogue,
    # then immediately back to bf16 so only bf16 activations stay live.
    for k in range(n_layers - 1):
        z = jnp.dot(h, w_ref[k], preferred_element_type=jnp.float32) + b_ref[k]
        h = jnp.maximum(z, 0.0).astype(jnp.bfloat16)
    # fc6: no ReLU, f32 output.
    out = jnp.dot(h, w_ref[n_layers - 1],
                  preferred_element_type=jnp.float32) + b_ref[n_layers - 1]
    o_ref[...] = out.astype(o_ref.dtype)


def prepare_params(params):
    """One-time weight prep (call once, reuse across forward calls).

    params: list of 6 (W, b); W shaped (in_features, out_features),
            b shaped (out_features,) or (1, out_features), f32.

    Pads every layer to a common lane-dense feature dim P (128 for typical
    DQN sizes, so no extra FLOP waste), casts weights to bf16 and stacks all
    layers into a single (L, P, P) weight operand plus a (L, 1, P) f32 bias
    operand.
    """
    n_in = params[0][0].shape[0]
    n_out = params[-1][0].shape[1]
    dims_p = [_round_up(d, LANE)
              for d in ([n_in] + [w.shape[1] for (w, _) in params])]
    P = max(dims_p)

    def pad2(a, rows, cols):
        return jnp.pad(a, ((0, rows - a.shape[0]), (0, cols - a.shape[1])))

    w_stack = jnp.stack(
        [pad2(w, P, P).astype(jnp.bfloat16) for (w, _) in params])
    b_stack = jnp.stack(
        [pad2(b.reshape(1, -1), 1, P).astype(jnp.float32) for (_, b) in params])
    return {"w": w_stack, "b": b_stack, "n_in": n_in, "n_out": n_out, "P": P}


def net_forward(x, prepared, *, batch_tile=512):
    """Forward pass.  x: (batch, n_in) f32.  Returns (batch, n_out) f32."""
    w, b = prepared["w"], prepared["b"]
    n_in, n_out, P = prepared["n_in"], prepared["n_out"], prepared["P"]
    n_layers = w.shape[0]
    batch = x.shape[0]
    assert x.shape[1] == n_in

    # Balanced, sublane-aligned batch tiles: minimal padding waste, and >= 2
    # grid steps whenever there are enough rows so both v7x TensorCores
    # (dimension_semantics="parallel") get work.
    n_tiles = pl.cdiv(batch, batch_tile)
    if n_tiles < 2 and batch > SUBLANE:
        n_tiles = 2
    tb = _round_up(pl.cdiv(batch, n_tiles), SUBLANE)
    n_tiles = pl.cdiv(batch, tb)
    batch_p = n_tiles * tb

    # Ship activations as bf16 (kernel would cast anyway -> zero precision
    # change, half the activation DMA bytes / VMEM double-buffer footprint).
    # NOTE: padded batch rows are zeros; they still pick up the bias through
    # the layers (garbage rows) and are discarded by the final slice -- never
    # reduce over the batch axis inside the kernel.
    x_p = jnp.pad(x, ((0, batch_p - batch), (0, P - n_in))).astype(jnp.bfloat16)

    out_p = pl.pallas_call(
        mlp_kernel,
        out_shape=jax.ShapeDtypeStruct((batch_p, P), jnp.float32),
        grid=(n_tiles,),
        in_specs=[
            pl.BlockSpec((tb, P), lambda i: (i, 0)),              # x tile (bf16)
            pl.BlockSpec((n_layers, P, P), lambda i: (0, 0, 0)),  # all weights
            pl.BlockSpec((n_layers, 1, P), lambda i: (0, 0, 0)),  # all biases
        ],
        out_specs=pl.BlockSpec((tb, P), lambda i: (i, 0)),
        compiler_params=pltpu.CompilerParams(
            dimension_semantics=("parallel",)),
    )(x_p, w, b)

    return out_p[:batch, :n_out]


def init_params(key, n_in, n_mid, n_out):
    """Deterministic synthetic init (uniform, same fan-in scaling as PyTorch)."""
    dims = [(n_in, n_mid), (n_mid, n_mid), (n_mid, n_mid),
            (n_mid, n_mid), (n_mid, n_mid), (n_mid, n_out)]
    params = []
    for (fan_in, fan_out) in dims:
        key, kw, kb = jax.random.split(key, 3)
        bound = 1.0 / jnp.sqrt(fan_in)
        w = jax.random.uniform(kw, (fan_in, fan_out), jnp.float32, -bound, bound)
        b = jax.random.uniform(kb, (1, fan_out), jnp.float32, -bound, bound)
        params.append((w, b))
    return params


def reference_forward(x, params):
    h = x
    for i, (w, b) in enumerate(params):
        h = h @ w + b
        if i < len(params) - 1:
            h = jnp.maximum(h, 0.0)
    return h


if __name__ == "__main__":
    key = jax.random.PRNGKey(0)
    n_in, n_mid, n_out = 32, 32, 8
    batch = 8

    key, kx = jax.random.split(key)
    x = jax.random.normal(kx, (batch, n_in), jnp.float32)
    params = init_params(key, n_in, n_mid, n_out)

    prepared = prepare_params(params)          # one-time weight prep
    out = net_forward(x, prepared)
    jax.block_until_ready(out)

    ref = reference_forward(x, params)
    assert out.shape == (batch, n_out)
    # bf16 MXU operands (f32 accumulation/epilogue) -> loosened tolerance
    # vs the f32 reference; acceptable for DQN Q-values.
    assert jnp.allclose(out, ref, atol=2e-2, rtol=2e-2)

    print("KERNEL_OK")
</pallas_src>

<mosaic_0001>
module attributes {stable_mosaic.version = 11 : i64} {
  func.func @mlp_kernel(%arg0: i32, %arg1: memref<8x128xbf16, #tpu.memory_space<vmem>>, %arg2: memref<6x128x128xbf16, #tpu.memory_space<vmem>>, %arg3: memref<6x1x128xf32, #tpu.memory_space<vmem>>, %arg4: memref<8x128xf32, #tpu.memory_space<vmem>>) attributes {dimension_semantics = [#tpu.dimension_semantics<parallel>], iteration_bounds = array<i64: 1>, scalar_prefetch = 0 : i64, scratch_operands = 0 : i64, tpu.core_type = #tpu.core_type<tc>, window_params = [{transform_indices = @transform_0, window_bounds = array<i64: 8, 128>}, {pipeline_mode = #tpu.pipeline_mode<synchronous>, transform_indices = @transform_1, window_bounds = array<i64: 6, 128, 128>}, {pipeline_mode = #tpu.pipeline_mode<synchronous>, transform_indices = @transform_2, window_bounds = array<i64: 6, 1, 128>}, {transform_indices = @transform_3, window_bounds = array<i64: 8, 128>}]} {
    %c0 = arith.constant 0 : index
    %c0_0 = arith.constant 0 : index
    %0 = vector.load %arg1[%c0, %c0_0] : memref<8x128xbf16, #tpu.memory_space<vmem>>, vector<8x128xbf16>
    %c0_1 = arith.constant 0 : index
    %c0_2 = arith.constant 0 : index
    %c0_3 = arith.constant 0 : index
    %1 = vector.load %arg2[%c0_1, %c0_2, %c0_3] : memref<6x128x128xbf16, #tpu.memory_space<vmem>>, vector<1x128x128xbf16>
    %2 = vector.shape_cast %1 : vector<1x128x128xbf16> to vector<128x128xbf16>
    %cst = arith.constant dense<0.000000e+00> : vector<8x128xf32>
    %3 = tpu.matmul %0, %2, %cst {dimension_numbers = #tpu.dot_dimension_numbers<[1], [0], [0], [1], [0, 0, 1, 1], [], []>} : vector<8x128xbf16>, vector<128x128xbf16>, vector<8x128xf32> -> vector<8x128xf32>
    %c0_4 = arith.constant 0 : index
    %c0_5 = arith.constant 0 : index
    %c0_6 = arith.constant 0 : index
    %4 = vector.load %arg3[%c0_4, %c0_5, %c0_6] : memref<6x1x128xf32, #tpu.memory_space<vmem>>, vector<1x1x128xf32>
    %5 = vector.shape_cast %4 : vector<1x1x128xf32> to vector<1x128xf32>
    %6 = vector.broadcast %5 : vector<1x128xf32> to vector<8x128xf32>
    %7 = arith.addf %3, %6 : vector<8x128xf32>
    %cst_7 = arith.constant 0.000000e+00 : f32
    %8 = vector.broadcast %cst_7 : f32 to vector<8x128xf32>
    %9 = arith.maximumf %7, %8 : vector<8x128xf32>
    %10 = arith.truncf %9 : vector<8x128xf32> to vector<8x128xbf16>
    %c1 = arith.constant 1 : index
    %c0_8 = arith.constant 0 : index
    %c0_9 = arith.constant 0 : index
    %11 = vector.load %arg2[%c1, %c0_8, %c0_9] : memref<6x128x128xbf16, #tpu.memory_space<vmem>>, vector<1x128x128xbf16>
    %12 = vector.shape_cast %11 : vector<1x128x128xbf16> to vector<128x128xbf16>
    %cst_10 = arith.constant dense<0.000000e+00> : vector<8x128xf32>
    %13 = tpu.matmul %10, %12, %cst_10 {dimension_numbers = #tpu.dot_dimension_numbers<[1], [0], [0], [1], [0, 0, 1, 1], [], []>} : vector<8x128xbf16>, vector<128x128xbf16>, vector<8x128xf32> -> vector<8x128xf32>
    %c1_11 = arith.constant 1 : index
    %c0_12 = arith.constant 0 : index
    %c0_13 = arith.constant 0 : index
    %14 = vector.load %arg3[%c1_11, %c0_12, %c0_13] : memref<6x1x128xf32, #tpu.memory_space<vmem>>, vector<1x1x128xf32>
    %15 = vector.shape_cast %14 : vector<1x1x128xf32> to vector<1x128xf32>
    %16 = vector.broadcast %15 : vector<1x128xf32> to vector<8x128xf32>
    %17 = arith.addf %13, %16 : vector<8x128xf32>
    %cst_14 = arith.constant 0.000000e+00 : f32
    %18 = vector.broadcast %cst_14 : f32 to vector<8x128xf32>
    %19 = arith.maximumf %17, %18 : vector<8x128xf32>
    %20 = arith.truncf %19 : vector<8x128xf32> to vector<8x128xbf16>
    %c2 = arith.constant 2 : index
    %c0_15 = arith.constant 0 : index
    %c0_16 = arith.constant 0 : index
    %21 = vector.load %arg2[%c2, %c0_15, %c0_16] : memref<6x128x128xbf16, #tpu.memory_space<vmem>>, vector<1x128x128xbf16>
    %22 = vector.shape_cast %21 : vector<1x128x128xbf16> to vector<128x128xbf16>
    %cst_17 = arith.constant dense<0.000000e+00> : vector<8x128xf32>
    %23 = tpu.matmul %20, %22, %cst_17 {dimension_numbers = #tpu.dot_dimension_numbers<[1], [0], [0], [1], [0, 0, 1, 1], [], []>} : vector<8x128xbf16>, vector<128x128xbf16>, vector<8x128xf32> -> vector<8x128xf32>
    %c2_18 = arith.constant 2 : index
    %c0_19 = arith.constant 0 : index
    %c0_20 = arith.constant 0 : index
    %24 = vector.load %arg3[%c2_18, %c0_19, %c0_20] : memref<6x1x128xf32, #tpu.memory_space<vmem>>, vector<1x1x128xf32>
    %25 = vector.shape_cast %24 : vector<1x1x128xf32> to vector<1x128xf32>
    %26 = vector.broadcast %25 : vector<1x128xf32> to vector<8x128xf32>
    %27 = arith.addf %23, %26 : vector<8x128xf32>
    %cst_21 = arith.constant 0.000000e+00 : f32
    %28 = vector.broadcast %cst_21 : f32 to vector<8x128xf32>
    %29 = arith.maximumf %27, %28 : vector<8x128xf32>
    %30 = arith.truncf %29 : vector<8x128xf32> to vector<8x128xbf16>
    %c3 = arith.constant 3 : index
    %c0_22 = arith.constant 0 : index
    %c0_23 = arith.constant 0 : index
    %31 = vector.load %arg2[%c3, %c0_22, %c0_23] : memref<6x128x128xbf16, #tpu.memory_space<vmem>>, vector<1x128x128xbf16>
    %32 = vector.shape_cast %31 : vector<1x128x128xbf16> to vector<128x128xbf16>
    %cst_24 = arith.constant dense<0.000000e+00> : vector<8x128xf32>
    %33 = tpu.matmul %30, %32, %cst_24 {dimension_numbers = #tpu.dot_dimension_numbers<[1], [0], [0], [1], [0, 0, 1, 1], [], []>} : vector<8x128xbf16>, vector<128x128xbf16>, vector<8x128xf32> -> vector<8x128xf32>
    %c3_25 = arith.constant 3 : index
    %c0_26 = arith.constant 0 : index
    %c0_27 = arith.constant 0 : index
    %34 = vector.load %arg3[%c3_25, %c0_26, %c0_27] : memref<6x1x128xf32, #tpu.memory_space<vmem>>, vector<1x1x128xf32>
    %35 = vector.shape_cast %34 : vector<1x1x128xf32> to vector<1x128xf32>
    %36 = vector.broadcast %35 : vector<1x128xf32> to vector<8x128xf32>
    %37 = arith.addf %33, %36 : vector<8x128xf32>
    %cst_28 = arith.constant 0.000000e+00 : f32
    %38 = vector.broadcast %cst_28 : f32 to vector<8x128xf32>
    %39 = arith.maximumf %37, %38 : vector<8x128xf32>
    %40 = arith.truncf %39 : vector<8x128xf32> to vector<8x128xbf16>
    %c4 = arith.constant 4 : index
    %c0_29 = arith.constant 0 : index
    %c0_30 = arith.constant 0 : index
    %41 = vector.load %arg2[%c4, %c0_29, %c0_30] : memref<6x128x128xbf16, #tpu.memory_space<vmem>>, vector<1x128x128xbf16>
    %42 = vector.shape_cast %41 : vector<1x128x128xbf16> to vector<128x128xbf16>
    %cst_31 = arith.constant dense<0.000000e+00> : vector<8x128xf32>
    %43 = tpu.matmul %40, %42, %cst_31 {dimension_numbers = #tpu.dot_dimension_numbers<[1], [0], [0], [1], [0, 0, 1, 1], [], []>} : vector<8x128xbf16>, vector<128x128xbf16>, vector<8x128xf32> -> vector<8x128xf32>
    %c4_32 = arith.constant 4 : index
    %c0_33 = arith.constant 0 : index
    %c0_34 = arith.constant 0 : index
    %44 = vector.load %arg3[%c4_32, %c0_33, %c0_34] : memref<6x1x128xf32, #tpu.memory_space<vmem>>, vector<1x1x128xf32>
    %45 = vector.shape_cast %44 : vector<1x1x128xf32> to vector<1x128xf32>
    %46 = vector.broadcast %45 : vector<1x128xf32> to vector<8x128xf32>
    %47 = arith.addf %43, %46 : vector<8x128xf32>
    %cst_35 = arith.constant 0.000000e+00 : f32
    %48 = vector.broadcast %cst_35 : f32 to vector<8x128xf32>
    %49 = arith.maximumf %47, %48 : vector<8x128xf32>
    %50 = arith.truncf %49 : vector<8x128xf32> to vector<8x128xbf16>
    %c5 = arith.constant 5 : index
    %c0_36 = arith.constant 0 : index
    %c0_37 = arith.constant 0 : index
    %51 = vector.load %arg2[%c5, %c0_36, %c0_37] : memref<6x128x128xbf16, #tpu.memory_space<vmem>>, vector<1x128x128xbf16>
    %52 = vector.shape_cast %51 : vector<1x128x128xbf16> to vector<128x128xbf16>
    %cst_38 = arith.constant dense<0.000000e+00> : vector<8x128xf32>
    %53 = tpu.matmul %50, %52, %cst_38 {dimension_numbers = #tpu.dot_dimension_numbers<[1], [0], [0], [1], [0, 0, 1, 1], [], []>} : vector<8x128xbf16>, vector<128x128xbf16>, vector<8x128xf32> -> vector<8x128xf32>
    %c5_39 = arith.constant 5 : index
    %c0_40 = arith.constant 0 : index
    %c0_41 = arith.constant 0 : index
    %54 = vector.load %arg3[%c5_39, %c0_40, %c0_41] : memref<6x1x128xf32, #tpu.memory_space<vmem>>, vector<1x1x128xf32>
    %55 = vector.shape_cast %54 : vector<1x1x128xf32> to vector<1x128xf32>
    %56 = vector.broadcast %55 : vector<1x128xf32> to vector<8x128xf32>
    %57 = arith.addf %53, %56 : vector<8x128xf32>
    %c0_42 = arith.constant 0 : index
    %c0_43 = arith.constant 0 : index
    %58 = vector.load %arg4[%c0_42, %c0_43] : memref<8x128xf32, #tpu.memory_space<vmem>>, vector<8x128xf32>
    tpu.vector_store %arg4[%c0_42, %c0_43], %57 {strides = array<i32>} : memref<8x128xf32, #tpu.memory_space<vmem>>, vector<8x128xf32>,
    return
  }
  func.func @transform_0(%arg0: i32) -> (i32, i32) {
    %c0_i32 = arith.constant 0 : i32
    %c0_i32_0 = arith.constant 0 : i32
    return %arg0, %c0_i32 : i32, i32
  }
  func.func @transform_1(%arg0: i32) -> (i32, i32, i32) {
    %c0_i32 = arith.constant 0 : i32
    %c0_i32_0 = arith.constant 0 : i32
    %c0_i32_1 = arith.constant 0 : i32
    %c0_i32_2 = arith.constant 0 : i32
    return %c0_i32, %c0_i32_0, %c0_i32_1 : i32, i32, i32
  }
  func.func @transform_2(%arg0: i32) -> (i32, i32, i32) {
    %c0_i32 = arith.constant 0 : i32
    %c0_i32_0 = arith.constant 0 : i32
    %c0_i32_1 = arith.constant 0 : i32
    %c0_i32_2 = arith.constant 0 : i32
    return %c0_i32, %c0_i32_0, %c0_i32_1 : i32, i32, i32
  }
  func.func @transform_3(%arg0: i32) -> (i32, i32) {
    %c0_i32 = arith.constant 0 : i32
    %c0_i32_0 = arith.constant 0 : i32
    return %arg0, %c0_i32 : i32, i32
  }
}

</mosaic_0001>

<bundles_post_ra>
// kernel: tpu_custom_call.1
= control target key start
LH: loop header
LB: loop body
LE: loop exit
PB: predicated region body
PF: predicated region fallthrough
CT: control target
= control target key end

     0   :  { %8 = vsyncpa [#allocation3], 0  ;;  %s982_s0 = inlined_call_operand.hbm [shape: bf16[8,128], index: 0, kind: input, shape index: {}]   ;;  %s983_s1 = inlined_call_operand.hbm [shape: bf16[6,128,128], index: 1, kind: input, shape index: {}]   ;;  %s984_s2 = inlined_call_operand.hbm [shape: f32[6,1,128], index: 2, kind: input, shape index: {}]   ;;  %s985_s3 = inlined_call_operand.hbm [shape: f32[8,128], index: 3, kind: output, shape index: {}]  }
   0x1   :  { %9 = vsyncpa [#allocation6], 0  ;;  %s26_s14 = sshll.u32 %s983_s1, 4  ;;  %s27_s14 = int_to_ptr.hbm [resolvable:$true] %s26_s14 }
   0x2   :  { %10 = vsyncpa [#allocation4], 0  ;;  %s942_s15 = smov [#allocation5]   ;;  %s16_s19 = sshll.u32 %s982_s0, 4  ;;  %s17_s19 = int_to_ptr.hbm [resolvable:$true] %s16_s19 }
   0x3   :  { %s28_s16 = sshll.u32 %s942_s15, 4  ;;  %s943_s20 = smov 64   ;;  %s29_s16 = int_to_ptr.vmem [resolvable:$true] %s28_s16 }
   0x4   :  { %s944_s21 = smov 4   ;;  %s945_s22 = smov [#allocation2]  }
   0x5   :  { %34 = dma.hbm_to_vmem [thread:$0]  %s27_s14, 6144, %s29_s16, [#allocation6], %s943_s20, %s943_s20, %s944_s21  }
   0x6   :  { %s18_s23 = sshll.u32 %s945_s22, 4  ;;  %s39_s26 = sshll.u32 %s984_s2, 4  ;;  %s19_s23 = int_to_ptr.vmem [resolvable:$true] %s18_s23  ;;  %s40_s26 = int_to_ptr.hbm [resolvable:$true] %s39_s26 }
   0x7   :  { %21 = dma.hbm_to_vmem [thread:$0]  %s17_s19, 64, %s19_s23, [#allocation3]  }
   0x8   :  { %s946_s1 = smov [#allocation7]   ;;  %s947_s28 = smov 16  }
   0x9   :  { %s41_s27 = sshll.u32 %s946_s1, 4  ;;  %s948_s29 = smov 1   ;;  %s42_s27 = int_to_ptr.vmem [resolvable:$true] %s41_s27 }
   0xa   :  { %47 = dma.hbm_to_vmem [thread:$0]  %s40_s26, 96, %s42_s27, [#allocation6], %s947_s28, %s947_s28, %s948_s29  }
   0xb   :  { %936 = dma.done.wait [#allocation3], 64  }
   0xc   :  { %937 = vsyncadd [#allocation3], 4294967232 }
   0xd   :  { %938 = dma.done.wait [#allocation6], 6240  }
   0xe   :  { %939 = vsyncadd [#allocation6], 4294961056  ;;  %v785_v0 = vld [vmem:[#allocation5 + $0x38] sm:$0xff]  ;;  %v784_v1 = vld [vmem:[#allocation5 + $0x30] sm:$0xff]  ;;  %s949_s0 = smov [#allocation8]   ;;  %s575_s5 = sshll.u32 %s985_s3, 4  ;;  %s576_s5 = int_to_ptr.hbm [resolvable:$true] %s575_s5 }
   0xf   :  { %129 = vmatpush.bf16.msra.mxu0 %v785_v0  ;;  %v793_v2 = vld [vmem:[#allocation5 + $0x78] sm:$0xff]  ;;  %v783_v3 = vld [vmem:[#allocation5 + $0x28] sm:$0xff]  ;;  %v792_v4 = vld [vmem:[#allocation5 + $0x70] sm:$0xff]  ;;  %s573_s2 = sshll.u32 %s949_s0, 4  ;;  %s574_s2 = int_to_ptr.vmem [resolvable:$true] %s573_s2 }
  0x10   :  { %214 = vmatpush.bf16.msra.mxu1 %v793_v2  ;;  %v791_v5 = vld [vmem:[#allocation5 + $0x68] sm:$0xff]  ;;  %v782_v6 = vld [vmem:[#allocation5 + $0x20] sm:$0xff]  ;;  %v781_v8 = vld [vmem:[#allocation5 + $0x18] sm:$0xff] }
  0x11   :  { %v790_v7 = vld [vmem:[#allocation5 + $0x60] sm:$0xff]  ;;  %v789_v9 = vld [vmem:[#allocation5 + $0x58] sm:$0xff]  ;;  %v780_v10 = vld [vmem:[#allocation5 + $0x10] sm:$0xff] }
  0x12   :  { %v788_v11 = vld [vmem:[#allocation5 + $0x50] sm:$0xff]  ;;  %v779_v12 = vld [vmem:[#allocation5 + $0x8] sm:$0xff]  ;;  %v778_v13 = vld [vmem:[#allocation5] sm:$0xff] }
  0x13   :  { %130 = vmatpush.bf16.msra.mxu0 %v784_v1  ;;  %v60_v14 = vld [vmem:[#allocation2] sm:$0xf]  ;;  %v787_v15 = vld [vmem:[#allocation5 + $0x48] sm:$0xff]  ;;  %v786_v16 = vld [vmem:[#allocation5 + $0x40] sm:$0xff] }
  0x14   :  { %215 = vmatpush.bf16.msra.mxu1 %v792_v4  ;;  %v801_v17 = vld [vmem:[#allocation5 + $0xb8] sm:$0xff]  ;;  %v800_v18 = vld [vmem:[#allocation5 + $0xb0] sm:$0xff]  ;;  %v799_v19 = vld [vmem:[#allocation5 + $0xa8] sm:$0xff] }
  0x15   :  { %299 = vmatpush.bf16.msra.mxu2 %v801_v17  ;;  %v798_v20 = vld [vmem:[#allocation5 + $0xa0] sm:$0xff]  ;;  %v797_v21 = vld [vmem:[#allocation5 + $0x98] sm:$0xff]  ;;  %v796_v22 = vld [vmem:[#allocation5 + $0x90] sm:$0xff] }
  0x16   :  { %v834_v23 = vld [vmem:[#allocation7] ss:$0 sm:$0xff]  ;;  %v795_v29 = vld [vmem:[#allocation5 + $0x88] sm:$0xff]  ;;  %v809_v31 = vld [vmem:[#allocation5 + $0xf8] sm:$0xff] }
  0x17   :  { %131 = vmatpush.bf16.msra.mxu0 %v783_v3  ;;  %v794_v30 = vld [vmem:[#allocation5 + $0x80] sm:$0xff]  ;;  %384 = vmatpush.bf16.msra.mxu3 %v809_v31  ;;  %v808_v32 = vld [vmem:[#allocation5 + $0xf0] sm:$0xff]  ;;  %v807_v33 = vld [vmem:[#allocation5 + $0xe8] sm:$0xff] }
  0x18   :  { %216 = vmatpush.bf16.msra.mxu1 %v791_v5  ;;  %v806_v34 = vld [vmem:[#allocation5 + $0xe0] sm:$0xff]  ;;  %v805_v35 = vld [vmem:[#allocation5 + $0xd8] sm:$0xff]  ;;  %v804_v36 = vld [vmem:[#allocation5 + $0xd0] sm:$0xff] }
  0x19   :  { %300 = vmatpush.bf16.msra.mxu2 %v800_v18  ;;  %v835_v37 = vld [vmem:[#allocation7 + $0x1] ss:$0 sm:$0xff]  ;;  %v803_v43 = vld [vmem:[#allocation5 + $0xc8] sm:$0xff]  ;;  %v817_v45 = vld [vmem:[#allocation5 + $0x138] sm:$0xff] }
  0x1a   :  { %v802_v44 = vld [vmem:[#allocation5 + $0xc0] sm:$0xff]  ;;  %v816_v46 = vld [vmem:[#allocation5 + $0x130] sm:$0xff]  ;;  %v815_v47 = vld [vmem:[#allocation5 + $0x128] sm:$0xff] }
  0x1b   :  { %132 = vmatpush.bf16.msra.mxu0 %v782_v6  ;;  %385 = vmatpush.bf16.msra.mxu3 %v808_v32  ;;  %v814_v48 = vld [vmem:[#allocation5 + $0x120] sm:$0xff]  ;;  %v813_v49 = vld [vmem:[#allocation5 + $0x118] sm:$0xff]  ;;  %v812_v50 = vld [vmem:[#allocation5 + $0x110] sm:$0xff] }
  0x1c   :  { %217 = vmatpush.bf16.msra.mxu1 %v790_v7  ;;  %v836_v51 = vld [vmem:[#allocation7 + $0x2] ss:$0 sm:$0xff]  ;;  %v811_v57 = vld [vmem:[#allocation5 + $0x108] sm:$0xff]  ;;  %v825_v59 = vld [vmem:[#allocation5 + $0x178] sm:$0xff] }
  0x1d   :  { %301 = vmatpush.bf16.msra.mxu2 %v799_v19  ;;  %v810_v58 = vld [vmem:[#allocation5 + $0x100] sm:$0xff]  ;;  %v824_v60 = vld [vmem:[#allocation5 + $0x170] sm:$0xff]  ;;  %v823_v61 = vld [vmem:[#allocation5 + $0x168] sm:$0xff] }
  0x1e   :  { %v822_v62 = vld [vmem:[#allocation5 + $0x160] sm:$0xff]  ;;  %v821_v63 = vld [vmem:[#allocation5 + $0x158] sm:$0xff]  ;;  %v820_v0 = vld [vmem:[#allocation5 + $0x150] sm:$0xff] }
  0x1f   :  { %133 = vmatpush.bf16.msra.mxu0 %v781_v8  ;;  %386 = vmatpush.bf16.msra.mxu3 %v807_v33  ;;  %v837_v1 = vld [vmem:[#allocation7 + $0x3] ss:$0 sm:$0xff]  ;;  %v819_v7 = vld [vmem:[#allocation5 + $0x148] sm:$0xff] }
  0x20   :  { %218 = vmatpush.bf16.msra.mxu1 %v789_v9  ;;  %v818_v8 = vld [vmem:[#allocation5 + $0x140] sm:$0xff] }
  0x21   :  { %302 = vmatpush.bf16.msra.mxu2 %v798_v20  ;;  %v838_v9 = vld [vmem:[#allocation7 + $0x4] ss:$0 sm:$0xff] }
  0x23   :  { %134 = vmatpush.bf16.msra.mxu0 %v780_v10  ;;  %387 = vmatpush.bf16.msra.mxu3 %v806_v34 }
  0x24   :  { %219 = vmatpush.bf16.msra.mxu1 %v788_v11 }
  0x25   :  { %303 = vmatpush.bf16.msra.mxu2 %v797_v21 }
  0x27   :  { %135 = vmatpush.bf16.msra.mxu0 %v779_v12  ;;  %388 = vmatpush.bf16.msra.mxu3 %v805_v35 }
  0x28   :  { %220 = vmatpush.bf16.msra.mxu1 %v787_v15  ;;  %v839_v15 = vld [vmem:[#allocation7 + $0x5] ss:$0 sm:$0xff] }
  0x29   :  { %304 = vmatpush.bf16.msra.mxu2 %v796_v22 }
  0x2b   :  { %136 = vmatpush.bf16.msra.mxu0 %v778_v13  ;;  %389 = vmatpush.bf16.msra.mxu3 %v804_v36 }
  0x2c   :  { %221 = vmatpush.bf16.msra.mxu1 %v786_v16 }
  0x2d   :  { %305 = vmatpush.bf16.msra.mxu2 %v795_v29 }
  0x2e   :  { %137 = vmatmul.bf16.vlgmr.msra.gmra.mxu0 %v60_v14 }
  0x2f   :  { %390 = vmatpush.bf16.msra.mxu3 %v803_v43  ;;  %469 = vmatpush.bf16.msrb.mxu0 %v817_v45 }
  0x30   :  { %554 = vmatpush.bf16.msrb.mxu1 %v825_v59 }
  0x31   :  { %306 = vmatpush.bf16.msra.mxu2 %v794_v30 }
  0x33   :  { %391 = vmatpush.bf16.msra.mxu3 %v802_v44  ;;  %470 = vmatpush.bf16.msrb.mxu0 %v816_v46 }
  0x34   :  { %555 = vmatpush.bf16.msrb.mxu1 %v824_v60 }
  0x37   :  { %471 = vmatpush.bf16.msrb.mxu0 %v815_v47 }
  0x38   :  { %556 = vmatpush.bf16.msrb.mxu1 %v823_v61 }
  0x3b   :  { %472 = vmatpush.bf16.msrb.mxu0 %v814_v48 }
  0x3c   :  { %557 = vmatpush.bf16.msrb.mxu1 %v822_v62 }
  0x3f   :  { %473 = vmatpush.bf16.msrb.mxu0 %v813_v49 }
  0x40   :  { %558 = vmatpush.bf16.msrb.mxu1 %v821_v63 }
  0x43   :  { %474 = vmatpush.bf16.msrb.mxu0 %v812_v50 }
  0x44   :  { %559 = vmatpush.bf16.msrb.mxu1 %v820_v0 }
  0x47   :  { %475 = vmatpush.bf16.msrb.mxu0 %v811_v57 }
  0x48   :  { %560 = vmatpush.bf16.msrb.mxu1 %v819_v7 }
  0x4b   :  { %476 = vmatpush.bf16.msrb.mxu0 %v810_v58 }
  0x4c   :  { %561 = vmatpush.bf16.msrb.mxu1 %v818_v8 }
  0xab   :  { %v138_v24 = vpop.f32.mrf.mxu0 }
  0xac   :  { %v139_v25 = vadd.f32 %v834_v23, %v138_v24 }
  0xae   :  { %v142_v26 = vmax.f32 %v139_v25, 0.0 }
  0xb0   :  { %v143_v27 = vpack.c.bf16 %v142_v26, %v142_v26 }
  0xb2   :  { %222 = vmatmul.bf16.vlgmr.msra.gmra.mxu1 %v143_v27 }
  0xb3   :  { %v140_v28 = vpop.f32.mrf.mxu0 }
 0x12f   :  { %v223_v38 = vpop.f32.mrf.mxu1 }
 0x130   :  { %v224_v39 = vadd.f32 %v835_v37, %v223_v38 }
 0x132   :  { %v227_v40 = vmax.f32 %v224_v39, 0.0 }
 0x134   :  { %v228_v41 = vpack.c.bf16 %v227_v40, %v227_v40 }
 0x136   :  { %307 = vmatmul.bf16.vlgmr.msra.gmra.mxu2 %v228_v41 }
 0x137   :  { %v225_v42 = vpop.f32.mrf.mxu1 }
 0x1b9   :  { %v308_v52 = vpop.f32.mrf.mxu2 }
 0x1ba   :  { %v309_v53 = vadd.f32 %v836_v51, %v308_v52 }
 0x1bc   :  { %v312_v54 = vmax.f32 %v309_v53, 0.0 }
 0x1be   :  { %v313_v55 = vpack.c.bf16 %v312_v54, %v312_v54 }
 0x1c0   :  { %392 = vmatmul.bf16.vlgmr.msra.gmra.mxu3 %v313_v55 }
 0x1c1   :  { %v310_v56 = vpop.f32.mrf.mxu2 }
 0x243   :  { %v393_v2 = vpop.f32.mrf.mxu3 }
 0x244   :  { %v394_v3 = vadd.f32 %v837_v1, %v393_v2 }
 0x246   :  { %v397_v4 = vmax.f32 %v394_v3, 0.0 }
 0x248   :  { %v398_v5 = vpack.c.bf16 %v397_v4, %v397_v4 }
 0x24a   :  { %477 = vmatmul.bf16.vlgmr.msrb.gmra.mxu0 %v398_v5 }
 0x24b   :  { %v395_v6 = vpop.f32.mrf.mxu3 }
 0x2c7   :  { %v478_v10 = vpop.f32.mrf.mxu0 }
 0x2c8   :  { %v479_v11 = vadd.f32 %v838_v9, %v478_v10 }
 0x2ca   :  { %v482_v12 = vmax.f32 %v479_v11, 0.0 }
 0x2cc   :  { %v483_v13 = vpack.c.bf16 %v482_v12, %v482_v12 }
 0x2ce   :  { %562 = vmatmul.bf16.vlgmr.msrb.gmra.mxu1 %v483_v13 }
 0x2cf   :  { %v480_v14 = vpop.f32.mrf.mxu0 }
 0x34b   :  { %v563_v16 = vpop.f32.mrf.mxu1 }
 0x34c   :  { %v564_v17 = vadd.f32 %v839_v15, %v563_v16 }
 0x34e   :  { %567 = vst [vmem:[#allocation8] sm:$0xff] %v564_v17 }
 0x34f   :  { %578 = dma.vmem_to_hbm [thread:$0]  %s574_s2, 128, %s576_s5, [#allocation4]  }
 0x353   :  { %v565_v18 = vpop.f32.mrf.mxu1 }
 0x354   :  { %940 = dma.done.wait [#allocation4], 128  }
 0x355   :  { %941 = vsyncadd [#allocation4], 4294967168 }
 0x356   :  { %583 = vsyncpa [#allocation3], 1 }
 0x357   :  { %584 = vsyncpa [#allocation6], 1 }
 0x358   :  { %585 = vsyncpa [#allocation4], 1 }

</bundles_post_ra>
